<compile_context>
chip_gen: v7x
topology: tpu7x:2x2x1
jax: 0.10.0
libtpu: 0.0.40
codegen_flags: <defaults>
</compile_context>

<pallas_src>
import jax
import jax.numpy as jnp
from jax import lax
from jax.experimental import pallas as pl
from jax.experimental.pallas import tpu as pltpu

_LANES = 128


def _make_kernel(lambd):
    def kernel(x_ref, o_ref):
        o_ref[...] = lambd(x_ref[...]).astype(o_ref.dtype)
    return kernel


def _chip_tuning():
    """(per-buffer block byte budget, vmem_limit_bytes, is_v7x) by generation."""
    try:
        kind = jax.devices()[0].device_kind.lower()
    except Exception:  # defensive: unknown backend
        kind = ""
    if "v7" in kind:
        # ~3.2 TB/s HBM per TC but only 64 MiB VMEM: large blocks to amortize
        # the ~0.35us per-grid-step overhead, with an explicit scoped-VMEM raise.
        return 6 << 20, 48 << 20, True
    if "v6" in kind:
        return 4 << 20, 32 << 20, False
    # v5e and unknown chips: conservative (16 MiB scoped-VMEM default).
    return 2 << 20, 24 << 20, False


def _pack_rows(itemsize):
    # Sublane packing multiple: 8 rows for 32-bit, 16 for 16-bit, 32 for 8-bit.
    return 8 * max(1, 4 // max(1, itemsize))


def _run_elementwise(lambd, x2d, out_dtype):
    """Run lambd elementwise over a (rows, W) array, W a multiple of 128."""
    rows, W = x2d.shape
    in_isz = jnp.dtype(x2d.dtype).itemsize
    out_isz = jnp.dtype(out_dtype).itemsize
    block_bytes, vmem_limit, is_v7 = _chip_tuning()

    row_mult = max(_pack_rows(in_isz), _pack_rows(out_isz))
    # Budget block rows against the wider of the two dtypes so neither the
    # input buffer nor the (possibly promoted) output buffer overshoots.
    widest = max(in_isz, out_isz)
    target_rows = max(row_mult,
                      (block_bytes // (W * widest)) // row_mult * row_mult)

    # Force >= 2 grid steps for > 1 MiB tensors (>= 4 on v7x: >= 2 per core)
    # so the next block's DMA-in overlaps this block's compute / writeback.
    total_bytes = rows * W * widest
    min_steps = 1
    if total_bytes > (1 << 20):
        min_steps = 4 if (is_v7 and total_bytes > (2 << 20)) else 2
    cap_rows = pl.cdiv(pl.cdiv(rows, min_steps), row_mult) * row_mult
    block_rows = max(row_mult, min(target_rows, cap_rows))
    if block_rows >= rows:
        block_rows = rows  # full-extent block: always legal

    n_elems = rows * W
    try:
        cost = pl.estimate_cost(
            lambd, jax.ShapeDtypeStruct((rows, W), x2d.dtype))
    except Exception:
        cost = pl.CostEstimate(flops=n_elems, transcendentals=0,
                               bytes_accessed=n_elems * (in_isz + out_isz))

    grid = (pl.cdiv(rows, block_rows),)
    return pl.pallas_call(
        _make_kernel(lambd),
        out_shape=jax.ShapeDtypeStruct((rows, W), out_dtype),
        grid_spec=pltpu.PrefetchScalarGridSpec(
            num_scalar_prefetch=0,
            grid=grid,
            in_specs=[pl.BlockSpec((block_rows, W), lambda i: (i, 0))],
            out_specs=pl.BlockSpec((block_rows, W), lambda i: (i, 0)),
        ),
        # TODO(synk): on v7x verify "parallel" actually shards the row axis
        # across both TensorCores; otherwise try pltpu.CORE_PARALLEL.
        compiler_params=pltpu.CompilerParams(
            dimension_semantics=("parallel",),
            vmem_limit_bytes=vmem_limit),
        cost_estimate=cost,
    )(x2d)


def lambda_layer(x, lambd=None):
    """Pallas equivalent of LambdaLayer(lambd).forward(x) for elementwise lambd."""
    if lambd is None:
        # LambdaLayer(None) is exactly the identity: no kernel, no HBM traffic.
        return x

    orig_shape = x.shape
    in_dtype = x.dtype
    n = x.size
    if n < _LANES:
        # Empty or tiny tensor: a kernel launch cannot pay for itself.
        return lambd(x)

    # Output dtype follows the lambda (dtype promotion), like PyTorch.  Also
    # reject non-shape-preserving lambdas up front: a reducing/reshaping lambda
    # would otherwise fail opaquely or silently produce wrong results.
    probe = jax.ShapeDtypeStruct((8, _LANES), in_dtype)
    probe_out = jax.eval_shape(lambd, probe)
    if probe_out.shape != probe.shape:
        raise ValueError(
            "lambda_layer Pallas kernel only supports shape-preserving "
            f"elementwise lambdas; probe {probe.shape} -> {probe_out.shape}")
    out_dtype = probe_out.dtype

    flat = x.reshape(-1)                      # contiguous reshape: no copy
    n_aligned = (n // _LANES) * _LANES
    n_tail = n - n_aligned

    # Widest lane count (multiple of 128) dividing the aligned prefix, so the
    # output stays lane-dense (unmasked vst) and rows per block stay large.
    W = _LANES
    for cand in (512, 256, 128):
        if n_aligned % cand == 0:
            W = cand
            break
    rows = n_aligned // W

    if n_tail == 0:
        out2d = _run_elementwise(lambd, flat.reshape(rows, W), out_dtype)
        return out2d.reshape(orig_shape)

    # Misaligned size: kernel on the 128-aligned prefix, plain JAX on the
    # (<128 element) tail, then stitch.  Replaces the old full-array pad +
    # full-result slice and never feeds padded zeros through lambd.
    prefix = lax.slice(flat, (0,), (n_aligned,)).reshape(rows, W)
    out_prefix = _run_elementwise(lambd, prefix, out_dtype).reshape(-1)
    tail = lax.slice(flat, (n_aligned,), (n,))
    out_tail = lambd(tail).astype(out_dtype)
    return jnp.concatenate([out_prefix, out_tail]).reshape(orig_shape)


if __name__ == "__main__":
    key = jax.random.PRNGKey(0)
    # NCHW input, small shapes (batch=2, channels=4, spatial=16x16).
    x = jax.random.normal(key, (2, 4, 16, 16), dtype=jnp.float32)

    # lambd=None -> identity, exactly LambdaLayer(None); short-circuited.
    y_id = jax.block_until_ready(lambda_layer(x, None))
    assert y_id.shape == x.shape and y_id.dtype == x.dtype
    assert jnp.allclose(y_id, x), "identity lambda mismatch"

    # Non-trivial elementwise lambda traced into the kernel (aligned path).
    lam = lambda v: v * 2.0 + 1.0
    y_lam = jax.block_until_ready(lambda_layer(x, lam))
    assert jnp.allclose(y_lam, x * 2.0 + 1.0, atol=1e-6), "affine lambda mismatch"

    # Dtype-promoting lambda on bf16 input (exercises packing-multiple rows and
    # the wider-output-dtype block budget).
    x_bf16 = x.astype(jnp.bfloat16)
    lam_promote = lambda v: v.astype(jnp.float32) * 0.5
    y_pro = jax.block_until_ready(lambda_layer(x_bf16, lam_promote))
    assert y_pro.dtype == jnp.float32
    assert jnp.allclose(y_pro, x_bf16.astype(jnp.float32) * 0.5, atol=1e-6), \
        "promoting lambda mismatch"

    # Misaligned size > 128: aligned prefix via the kernel, tail via plain JAX.
    x_mis = jax.random.normal(jax.random.PRNGKey(1), (7, 129), dtype=jnp.float32)
    y_mis = jax.block_until_ready(lambda_layer(x_mis, jnp.exp))
    assert jnp.allclose(y_mis, jnp.exp(x_mis), rtol=1e-5, atol=1e-5), \
        "misaligned exp lambda mismatch"

    # Tiny (<128 elems) tensor short-circuits to plain JAX.
    x_tiny = jax.random.normal(jax.random.PRNGKey(2), (3, 5, 7), dtype=jnp.float32)
    y_tiny = jax.block_until_ready(lambda_layer(x_tiny, jnp.exp))
    assert jnp.allclose(y_tiny, jnp.exp(x_tiny), rtol=1e-5, atol=1e-5), \
        "tiny exp lambda mismatch"

    # TODO(synk): non-elementwise lambdas (reductions/reshapes/convs) are not
    # supported by this flattened-tile kernel; they'd need lambda-specific kernels.
    print("KERNEL_OK")
</pallas_src>

<mosaic_0001>
module attributes {stable_mosaic.version = 11 : i64} {
  func.func @kernel(%arg0: i32, %arg1: memref<4x512xf32, #tpu.memory_space<vmem>>, %arg2: memref<4x512xf32, #tpu.memory_space<vmem>>) attributes {dimension_semantics = [#tpu.dimension_semantics<parallel>], iteration_bounds = array<i64: 1>, scalar_prefetch = 0 : i64, scratch_operands = 0 : i64, tpu.core_type = #tpu.core_type<tc>, window_params = [{transform_indices = @transform_0, window_bounds = array<i64: 4, 512>}, {transform_indices = @transform_1, window_bounds = array<i64: 4, 512>}]} {
    %c0 = arith.constant 0 : index
    %c0_0 = arith.constant 0 : index
    %0 = vector.load %arg1[%c0, %c0_0] : memref<4x512xf32, #tpu.memory_space<vmem>>, vector<4x512xf32>
    %cst = arith.constant 2.000000e+00 : f32
    %1 = vector.broadcast %cst : f32 to vector<4x512xf32>
    %2 = arith.mulf %0, %1 : vector<4x512xf32>
    %cst_1 = arith.constant 1.000000e+00 : f32
    %3 = vector.broadcast %cst_1 : f32 to vector<4x512xf32>
    %4 = arith.addf %2, %3 : vector<4x512xf32>
    %c0_2 = arith.constant 0 : index
    %c0_3 = arith.constant 0 : index
    %5 = vector.load %arg2[%c0_2, %c0_3] : memref<4x512xf32, #tpu.memory_space<vmem>>, vector<4x512xf32>
    tpu.vector_store %arg2[%c0_2, %c0_3], %4 {strides = array<i32>} : memref<4x512xf32, #tpu.memory_space<vmem>>, vector<4x512xf32>,
    return
  }
  func.func @transform_0(%arg0: i32) -> (i32, i32) {
    %c0_i32 = arith.constant 0 : i32
    %c0_i32_0 = arith.constant 0 : i32
    return %arg0, %c0_i32 : i32, i32
  }
  func.func @transform_1(%arg0: i32) -> (i32, i32) {
    %c0_i32 = arith.constant 0 : i32
    %c0_i32_0 = arith.constant 0 : i32
    return %arg0, %c0_i32 : i32, i32
  }
}

</mosaic_0001>

<bundles_post_ra>
// kernel: tpu_custom_call.1
= control target key start
LH: loop header
LB: loop body
LE: loop exit
PB: predicated region body
PF: predicated region fallthrough
CT: control target
= control target key end

     0   :  { %6 = vsyncpa [#allocation3], 0  ;;  %s130_s0 = inlined_call_operand.hbm [shape: f32[4,512], index: 0, kind: input, shape index: {}]   ;;  %s131_s1 = inlined_call_operand.hbm [shape: f32[4,512], index: 1, kind: output, shape index: {}]  }
   0x1   :  { %7 = vsyncpa [#allocation4], 0  ;;  %s94_s6 = smov [#allocation2]   ;;  %s46_s10 = scalar_lea.hbm %s130_s0, 256 }
   0x2   :  { %s14_s7 = sshll.u32 %s94_s6, 4  ;;  %p47_p0 = scmp.ne.s32.totalorder %s130_s0, %s46_s10  ;;  %s15_s7 = int_to_ptr.vmem [resolvable:$true] %s14_s7 }
   0x3   :  { %p50_p1 = scmp.lt.u32.totalorder %s46_s10, %s130_s0 }
   0x5   :  { %p52_p2 = pnand %p50_p1, %p47_p0 }
   0x7   :  { %55 = shalt.err (!%p52_p2)
}
   0x8   :  { %s56_s15 = scalar_lea.vmem %s15_s7, 256  ;;  %p61_p4 = scmp.lt.s32.totalorder %s15_s7, %s15_s7 }
   0x9   :  { %p57_p3 = scmp.ne.s32.totalorder %s15_s7, %s56_s15  ;;  %p62_p5 = scmp.lt.s32.totalorder %s56_s15, %s56_s15 }
   0xb   :  { %p63_p6 = por %p62_p5, %p61_p4 }
   0xd   :  { %p64_p7 = pnand %p63_p6, %p57_p3 }
   0xf   :  { %67 = shalt.err (!%p64_p7)
}
  0x10   :  { %17 = dma.hbm_to_vmem [thread:$0]  %s130_s0, 256, %s15_s7, [#allocation3]  }
  0x11   :  { %90 = dma.done.wait [#allocation3], 256  }
  0x12   :  { %91 = vsyncadd [#allocation3], 4294967040  ;;  %v21_v0 = vld [vmem:[#allocation2] sm:$0xff]  ;;  %v22_v1 = vld [vmem:[#allocation2 + $0x8] sm:$0xff]  ;;  %s95_s18 = smov [#allocation5]  }
  0x13   :  { %s35_s19 = sshll.u32 %s95_s18, 4  ;;  %v23_v2 = vmul.f32 2.0, %v21_v0  ;;  %v24_v3 = vmul.f32 2.0, %v22_v1  ;;  %s36_s19 = int_to_ptr.vmem [resolvable:$true] %s35_s19 }
  0x14   :  { %s68_s20 = scalar_lea.vmem %s36_s19, 256  ;;  %p73_p9 = scmp.lt.s32.totalorder %s36_s19, %s36_s19 }
  0x15   :  { %v25_v4 = vadd.f32 1.0, %v23_v2  ;;  %v26_v5 = vadd.f32 1.0, %v24_v3  ;;  %p69_p8 = scmp.ne.s32.totalorder %s36_s19, %s68_s20  ;;  %p74_p10 = scmp.lt.s32.totalorder %s68_s20, %s68_s20 }
  0x17   :  { %27 = vst [vmem:[#allocation5] sm:$0xff] %v25_v4  ;;  %28 = vst [vmem:[#allocation5 + $0x8] sm:$0xff] %v26_v5  ;;  %p75_p11 = por %p74_p10, %p73_p9 }
  0x19   :  { %p76_p12 = pnand %p75_p11, %p69_p8 }
  0x1b   :  { %79 = shalt.err (!%p76_p12)
}
  0x1c   :  { %s80_s22 = scalar_lea.hbm %s131_s1, 256 }
  0x1d   :  { %p81_p13 = scmp.ne.s32.totalorder %s131_s1, %s80_s22  ;;  %p84_p0 = scmp.lt.u32.totalorder %s80_s22, %s131_s1 }
  0x1f   :  { %p86_p1 = pnand %p84_p0, %p81_p13 }
  0x21   :  { %89 = shalt.err (!%p86_p1)
}
  0x22   :  { %38 = dma.vmem_to_hbm [thread:$0]  %s36_s19, 256, %s131_s1, [#allocation4]  }
  0x23   :  { %92 = dma.done.wait [#allocation4], 256  }
  0x24   :  { %93 = vsyncadd [#allocation4], 4294967040 }
  0x25   :  { %42 = vsyncpa [#allocation3], 1 }
  0x26   :  { %43 = vsyncpa [#allocation4], 1 }

</bundles_post_ra>
